<compile_context>
chip_gen: v6e
topology: v6e:2x2x1
jax: 0.10.0
libtpu: 0.0.40
codegen_flags: <defaults>
</compile_context>

<pallas_src>
import functools

import jax
import jax.numpy as jnp
from jax.experimental import pallas as pl
from jax.experimental.pallas import tpu as pltpu


# ----------------------------- Pallas kernel --------------------------------

def _snresnet_kernel(x_ref, w0t_ref, b0_ref, wt_ref, b_ref, o_ref, h_ref, *,
                     weights_resident):
    """One (batch_tile, layer) grid step.

    x_ref   : (TB, Fp)            compute dtype (f32 or bf16)
    w0t_ref : (Fp, Hp)            compute dtype (VMEM-resident)
    b0_ref  : (1, Hp)             f32           (VMEM-resident)
    wt_ref  : (Lk, Hp, Hp) if weights_resident else (1, Hp, Hp)  compute dtype
    b_ref   : (Lk, 1, Hp)         f32           (VMEM-resident)
    o_ref   : (TB, Hp)            f32
    h_ref   : (TB, Hp)            f32 VMEM scratch (carried across layer axis)
    """
    layer = pl.program_id(1)
    n_layers = pl.num_programs(1)

    # Input projection only on the first layer step of this batch tile.
    @pl.when(layer == 0)
    def _():
        h_ref[...] = (
            jnp.dot(x_ref[...], w0t_ref[...],
                    preferred_element_type=jnp.float32)
            + b0_ref[...]
        )

    # Residual block: h = h + relu(h @ Wi^T + bi)  (dropout = identity, eval).
    h = h_ref[...]
    w = wt_ref[layer] if weights_resident else wt_ref[0]          # (Hp, Hp)
    z = jnp.dot(h.astype(w.dtype), w,
                preferred_element_type=jnp.float32) + b_ref[layer]  # (1, Hp) bcast
    h = h + jnp.maximum(z, 0.0)
    h_ref[...] = h

    # Store once, after the last layer (output block is resident across the
    # layer axis since its index_map only depends on the batch index).
    @pl.when(layer == n_layers - 1)
    def _():
        o_ref[...] = h.astype(o_ref.dtype)


# ------------------------------- utilities ----------------------------------

def _round_up(x, m):
    return (x + m - 1) // m * m


def _cdiv(a, b):
    return -(-a // b)


def _default_vmem_budget():
    """~75% of the chip's VMEM; safe fallback = 64 MiB part (v7x)."""
    cap = None
    try:
        cap = int(pltpu.get_tpu_info().vmem_capacity_bytes)
    except Exception:
        cap = None
    if not cap or cap <= 0:
        cap = 64 * 1024 * 1024
    return (cap * 3) // 4


# -------------------- parameter padding (done ONCE at init) -----------------

def pad_snresnet_params(w0t, b0, wt, b, *, compute_dtype=jnp.bfloat16):
    """Pad/cast parameters once, outside the per-call forward.

    w0t:(F,H) b0:(1,H) wt:(L,H,H) b:(L,1,H)  ->  dict of padded arrays +
    static logical dims.  compute_dtype applies to matmul operands only;
    biases stay f32 (accumulation is always f32 in the kernel).
    """
    F, H = int(w0t.shape[0]), int(w0t.shape[1])
    L = int(wt.shape[0])
    Hp = _round_up(max(H, 1), 128)
    Fp = _round_up(max(F, 1), 128)
    Lk = max(L, 1)          # zero-weight residual layer is a no-op (L == 0)

    cdt = compute_dtype
    w0tp = jnp.zeros((Fp, Hp), cdt).at[:F, :H].set(w0t.astype(cdt))
    b0p = jnp.zeros((1, Hp), jnp.float32).at[:, :H].set(b0.astype(jnp.float32))
    wtp = jnp.zeros((Lk, Hp, Hp), cdt).at[:L, :H, :H].set(wt.astype(cdt))
    bp = jnp.zeros((Lk, 1, Hp), jnp.float32).at[:L, :, :H].set(
        b.astype(jnp.float32))
    return dict(w0tp=w0tp, b0p=b0p, wtp=wtp, bp=bp, F=F, H=H, L=L)


# --------------------------------- forward -----------------------------------

def snresnet_forward(x, params, *, block_b=512, vmem_budget_bytes=None):
    """x:(B,F) + padded params -> (B,H) float32."""
    w0tp, b0p, wtp, bp = params["w0tp"], params["b0p"], params["wtp"], params["bp"]
    F, H = params["F"], params["H"]
    B = int(x.shape[0])
    Fp, Hp = int(w0tp.shape[0]), int(w0tp.shape[1])
    Lk = int(wtp.shape[0])
    cdt = wtp.dtype
    wsz = jnp.dtype(cdt).itemsize
    # bf16 packs two rows per sublane -> round the batch tile to 16, f32 to 8.
    sub = 16 if wsz == 2 else 8

    if vmem_budget_bytes is None:
        vmem_budget_bytes = _default_vmem_budget()
    budget = int(vmem_budget_bytes)

    b_rounded = _round_up(max(B, 1), sub)

    def vmem_need(tb, resident):
        # Conservative: count 2 pipeline buffers for every BlockSpec'd array.
        wt_bytes = 2 * (Lk if resident else 1) * Hp * Hp * wsz
        const_bytes = (2 * Fp * Hp * wsz          # w0t (resident)
                       + 2 * 8 * Hp * 4           # b0 (sublane-padded)
                       + 2 * Lk * 8 * Hp * 4)     # per-layer biases (resident)
        per_tile = (2 * tb * Fp * wsz             # x tile
                    + 2 * tb * Hp * 4             # output tile
                    + tb * Hp * 4)                # h scratch
        return wt_bytes + const_bytes + per_tile

    # --- choose batch tile & weight residency ---
    tb = _round_up(min(block_b, max(B, 1)), sub)
    while tb > sub and vmem_need(tb, resident=False) > budget:
        tb = max(sub, _round_up(tb // 2, sub))

    resident = vmem_need(tb, resident=True) <= budget
    if resident:
        # Ensure >= 2 batch tiles when B allows, so v7x's 2nd TC gets work.
        if b_rounded >= 2 * sub:
            tb = min(tb, _round_up(_cdiv(b_rounded, 2), sub))
    else:
        # Streaming weights: grow the batch tile toward the MXU roofline.
        while 2 * tb <= b_rounded and 2 * tb <= 2048 and \
                vmem_need(2 * tb, resident=False) <= budget:
            tb *= 2

    Bp = _round_up(max(B, 1), tb)
    grid = (Bp // tb, Lk)

    # Per-call padding of x only (skipped when already aligned).
    if B == Bp and F == Fp and x.dtype == cdt:
        xp = x
    else:
        xp = jnp.zeros((Bp, Fp), cdt).at[:B, :F].set(x.astype(cdt))

    # Weight BlockSpec: resident (whole stack, constant index map) or streamed.
    if resident:
        wt_spec = pl.BlockSpec((Lk, Hp, Hp), lambda i, l: (0, 0, 0))
    else:
        wt_spec = pl.BlockSpec((1, Hp, Hp), lambda i, l: (l, 0, 0))

    # Cost estimate (helps XLA schedule around the custom call).
    n_btiles = Bp // tb
    wt_reads = 1 if resident else n_btiles
    flops = 2 * Bp * Hp * (Fp + Lk * Hp)
    bytes_accessed = (Bp * Fp * wsz                    # x
                      + Fp * Hp * wsz                  # w0t
                      + wt_reads * Lk * Hp * Hp * wsz  # residual weights
                      + Hp * 4 + Lk * Hp * 4           # biases
                      + Bp * Hp * 4)                   # output
    cost = pl.CostEstimate(flops=int(flops), transcendentals=0,
                           bytes_accessed=int(bytes_accessed))

    kernel = functools.partial(_snresnet_kernel, weights_resident=resident)

    out_padded = pl.pallas_call(
        kernel,
        out_shape=jax.ShapeDtypeStruct((Bp, Hp), jnp.float32),
        grid_spec=pltpu.PrefetchScalarGridSpec(
            num_scalar_prefetch=0,
            grid=grid,
            in_specs=[
                # x tile: changes only with the batch index.
                pl.BlockSpec((tb, Fp), lambda i, l: (i, 0)),
                # Input-projection weight / bias: constant -> VMEM-resident.
                pl.BlockSpec((Fp, Hp), lambda i, l: (0, 0)),
                pl.BlockSpec((1, Hp), lambda i, l: (0, 0)),
                # Residual weights: resident stack or streamed per-layer slab.
                wt_spec,
                # All per-layer biases: one resident block.
                pl.BlockSpec((Lk, 1, Hp), lambda i, l: (0, 0, 0)),
            ],
            out_specs=pl.BlockSpec((tb, Hp), lambda i, l: (i, 0)),
            scratch_shapes=[pltpu.VMEM((tb, Hp), jnp.float32)],
        ),
        compiler_params=pltpu.CompilerParams(
            dimension_semantics=("parallel", "arbitrary"),
            vmem_limit_bytes=budget,
        ),
        cost_estimate=cost,
    )(xp, w0tp, b0p, wtp, bp)

    return out_padded[:B, :H]


# ----------------------- spectral-norm parameter setup -----------------------

def _l2_normalize(v, eps=1e-12):
    return v / (jnp.linalg.norm(v) + eps)


def spectral_normalize_weight(w, u0, norm_bound=0.95, n_power_iterations=1):
    """SNGP-style bounded spectral norm of a Linear weight w:(out,in)."""
    u = _l2_normalize(u0)
    v = jnp.zeros((w.shape[1],), w.dtype)
    for _ in range(n_power_iterations):
        v = _l2_normalize(w.T @ u)
        u = _l2_normalize(w @ v)
    sigma = u @ (w @ v)
    scale = jnp.where(sigma > norm_bound, norm_bound / sigma, 1.0)
    return w * scale


def init_snresnet_params(key, num_inputs_features, num_layers, num_hidden,
                         spec_norm_bound=0.95, n_power_iterations=1):
    """Deterministic parameter init mirroring nn.Linear shapes, then SN."""
    keys = jax.random.split(key, 3 * (num_layers + 1))
    kidx = 0

    def linear_init(k_w, k_b, fan_in, fan_out):
        bound = 1.0 / jnp.sqrt(fan_in)
        w = jax.random.uniform(k_w, (fan_out, fan_in), jnp.float32, -bound, bound)
        bb = jax.random.uniform(k_b, (fan_out,), jnp.float32, -bound, bound)
        return w, bb

    # input layer
    w0, b0 = linear_init(keys[kidx], keys[kidx + 1],
                         num_inputs_features, num_hidden)
    kidx += 2
    u0 = jax.random.normal(keys[kidx], (num_hidden,), jnp.float32)
    kidx += 1
    w0 = spectral_normalize_weight(w0, u0, spec_norm_bound, n_power_iterations)

    # residual layers
    ws, bs = [], []
    for _ in range(num_layers):
        w, bb = linear_init(keys[kidx], keys[kidx + 1], num_hidden, num_hidden)
        kidx += 2
        u = jax.random.normal(keys[kidx], (num_hidden,), jnp.float32)
        kidx += 1
        w = spectral_normalize_weight(w, u, spec_norm_bound, n_power_iterations)
        ws.append(w)
        bs.append(bb)

    # Pre-transpose for feature-last matmuls inside the kernel.
    w0t = w0.T                                                   # (F, H)
    b0 = b0.reshape(1, num_hidden)                               # (1, H)
    if num_layers > 0:
        wt = jnp.stack([w.T for w in ws], axis=0)                # (L, H, H)
        b = jnp.stack(bs, axis=0).reshape(num_layers, 1, num_hidden)
    else:
        wt = jnp.zeros((0, num_hidden, num_hidden), jnp.float32)
        b = jnp.zeros((0, 1, num_hidden), jnp.float32)
    return w0t, b0, wt, b


# ---------------------------------- main -------------------------------------

if __name__ == "__main__":
    # Small, forward-consistent shapes. (At these sizes Pallas is overhead-bound;
    # the kernel is structured so it scales to large B/H/L without VMEM blowup.)
    batch = 8
    num_inputs_features = 32
    num_layers = 3
    num_hidden = 64
    dropout_rate = 0.1      # identity in eval mode
    num_outputs = 4         # unused by forward()

    key = jax.random.PRNGKey(0)
    k_x, k_p = jax.random.split(key)

    x = jax.random.normal(k_x, (batch, num_inputs_features), jnp.float32)
    w0t, b0, wt, b = init_snresnet_params(
        k_p, num_inputs_features, num_layers, num_hidden,
        spec_norm_bound=0.95, n_power_iterations=1)

    # Pure-JAX reference of the same forward semantics.
    h_ref = x @ w0t + b0
    for i in range(num_layers):
        h_ref = h_ref + jnp.maximum(h_ref @ wt[i] + b[i], 0.0)

    # f32 compute path (tight correctness check).
    params_f32 = pad_snresnet_params(w0t, b0, wt, b, compute_dtype=jnp.float32)
    out = snresnet_forward(x, params_f32)
    jax.block_until_ready(out)
    assert out.shape == (batch, num_hidden)
    assert jnp.allclose(out, h_ref, atol=1e-5, rtol=1e-5)

    # Default bf16-weight / f32-accumulate path (recommended); loose check.
    params_bf16 = pad_snresnet_params(w0t, b0, wt, b)   # compute_dtype=bf16
    out_bf16 = snresnet_forward(x, params_bf16)
    jax.block_until_ready(out_bf16)
    assert jnp.allclose(out_bf16, h_ref, atol=5e-2, rtol=5e-2)

    print("KERNEL_OK")
</pallas_src>

<mosaic_0001>
module attributes {stable_mosaic.version = 11 : i64} {
  func.func @_snresnet_kernel(%arg0: i32, %arg1: i32, %arg2: memref<8x128xf32, #tpu.memory_space<vmem>>, %arg3: memref<128x128xf32, #tpu.memory_space<vmem>>, %arg4: memref<1x128xf32, #tpu.memory_space<vmem>>, %arg5: memref<3x128x128xf32, #tpu.memory_space<vmem>>, %arg6: memref<3x1x128xf32, #tpu.memory_space<vmem>>, %arg7: memref<8x128xf32, #tpu.memory_space<vmem>>, %arg8: memref<8x128xf32, #tpu.memory_space<vmem>>) attributes {dimension_semantics = [#tpu.dimension_semantics<parallel>, #tpu.dimension_semantics<arbitrary>], iteration_bounds = array<i64: 1, 3>, scalar_prefetch = 0 : i64, scratch_operands = 1 : i64, tpu.core_type = #tpu.core_type<tc>, window_params = [{transform_indices = @transform_0, window_bounds = array<i64: 8, 128>}, {pipeline_mode = #tpu.pipeline_mode<synchronous>, transform_indices = @transform_1, window_bounds = array<i64: 128, 128>}, {pipeline_mode = #tpu.pipeline_mode<synchronous>, transform_indices = @transform_2, window_bounds = array<i64: 1, 128>}, {pipeline_mode = #tpu.pipeline_mode<synchronous>, transform_indices = @transform_3, window_bounds = array<i64: 3, 128, 128>}, {pipeline_mode = #tpu.pipeline_mode<synchronous>, transform_indices = @transform_4, window_bounds = array<i64: 3, 1, 128>}, {transform_indices = @transform_5, window_bounds = array<i64: 8, 128>}]} {
    %c0_i32 = arith.constant 0 : i32
    %0 = arith.cmpi eq, %arg1, %c0_i32 : i32
    %1 = arith.extui %0 : i1 to i32
    %c0_i32_0 = arith.constant 0 : i32
    %2 = arith.cmpi ne, %1, %c0_i32_0 : i32
    scf.if %2 {
      %c0_10 = arith.constant 0 : index
      %c0_11 = arith.constant 0 : index
      %20 = vector.load %arg2[%c0_10, %c0_11] : memref<8x128xf32, #tpu.memory_space<vmem>>, vector<8x128xf32>
      %c0_12 = arith.constant 0 : index
      %c0_13 = arith.constant 0 : index
      %21 = vector.load %arg3[%c0_12, %c0_13] : memref<128x128xf32, #tpu.memory_space<vmem>>, vector<128x128xf32>
      %cst_14 = arith.constant dense<0.000000e+00> : vector<8x128xf32>
      %22 = tpu.matmul %20, %21, %cst_14 {dimension_numbers = #tpu.dot_dimension_numbers<[1], [0], [0], [1], [0, 0, 1, 1], [], []>} : vector<8x128xf32>, vector<128x128xf32>, vector<8x128xf32> -> vector<8x128xf32>
      %c0_15 = arith.constant 0 : index
      %c0_16 = arith.constant 0 : index
      %23 = vector.load %arg4[%c0_15, %c0_16] : memref<1x128xf32, #tpu.memory_space<vmem>>, vector<1x128xf32>
      %24 = vector.broadcast %23 : vector<1x128xf32> to vector<8x128xf32>
      %25 = arith.addf %22, %24 : vector<8x128xf32>
      %c0_17 = arith.constant 0 : index
      %c0_18 = arith.constant 0 : index
      %26 = vector.load %arg8[%c0_17, %c0_18] : memref<8x128xf32, #tpu.memory_space<vmem>>, vector<8x128xf32>
      tpu.vector_store %arg8[%c0_17, %c0_18], %25 {strides = array<i32>} : memref<8x128xf32, #tpu.memory_space<vmem>>, vector<8x128xf32>,
    } else {
    }
    %c0 = arith.constant 0 : index
    %c0_1 = arith.constant 0 : index
    %3 = vector.load %arg8[%c0, %c0_1] : memref<8x128xf32, #tpu.memory_space<vmem>>, vector<8x128xf32>
    %4 = arith.index_cast %arg1 : i32 to index
    %c0_2 = arith.constant 0 : index
    %c0_3 = arith.constant 0 : index
    %5 = vector.load %arg5[%4, %c0_2, %c0_3] : memref<3x128x128xf32, #tpu.memory_space<vmem>>, vector<1x128x128xf32>
    %6 = vector.shape_cast %5 : vector<1x128x128xf32> to vector<128x128xf32>
    %cst = arith.constant dense<0.000000e+00> : vector<8x128xf32>
    %7 = tpu.matmul %3, %6, %cst {dimension_numbers = #tpu.dot_dimension_numbers<[1], [0], [0], [1], [0, 0, 1, 1], [], []>} : vector<8x128xf32>, vector<128x128xf32>, vector<8x128xf32> -> vector<8x128xf32>
    %8 = arith.index_cast %arg1 : i32 to index
    %c0_4 = arith.constant 0 : index
    %c0_5 = arith.constant 0 : index
    %9 = vector.load %arg6[%8, %c0_4, %c0_5] : memref<3x1x128xf32, #tpu.memory_space<vmem>>, vector<1x1x128xf32>
    %10 = vector.shape_cast %9 : vector<1x1x128xf32> to vector<1x128xf32>
    %11 = vector.broadcast %10 : vector<1x128xf32> to vector<8x128xf32>
    %12 = arith.addf %7, %11 : vector<8x128xf32>
    %cst_6 = arith.constant 0.000000e+00 : f32
    %13 = vector.broadcast %cst_6 : f32 to vector<8x128xf32>
    %14 = arith.maximumf %12, %13 : vector<8x128xf32>
    %15 = arith.addf %3, %14 : vector<8x128xf32>
    %c0_7 = arith.constant 0 : index
    %c0_8 = arith.constant 0 : index
    %16 = vector.load %arg8[%c0_7, %c0_8] : memref<8x128xf32, #tpu.memory_space<vmem>>, vector<8x128xf32>
    tpu.vector_store %arg8[%c0_7, %c0_8], %15 {strides = array<i32>} : memref<8x128xf32, #tpu.memory_space<vmem>>, vector<8x128xf32>,
    %c2_i32 = arith.constant 2 : i32
    %17 = arith.cmpi eq, %arg1, %c2_i32 : i32
    %18 = arith.extui %17 : i1 to i32
    %c0_i32_9 = arith.constant 0 : i32
    %19 = arith.cmpi ne, %18, %c0_i32_9 : i32
    scf.if %19 {
      %c0_10 = arith.constant 0 : index
      %c0_11 = arith.constant 0 : index
      %20 = vector.load %arg7[%c0_10, %c0_11] : memref<8x128xf32, #tpu.memory_space<vmem>>, vector<8x128xf32>
      tpu.vector_store %arg7[%c0_10, %c0_11], %15 {strides = array<i32>} : memref<8x128xf32, #tpu.memory_space<vmem>>, vector<8x128xf32>,
    } else {
    }
    return
  }
  func.func @transform_0(%arg0: i32, %arg1: i32) -> (i32, i32) {
    %c0_i32 = arith.constant 0 : i32
    %c0_i32_0 = arith.constant 0 : i32
    return %arg0, %c0_i32 : i32, i32
  }
  func.func @transform_1(%arg0: i32, %arg1: i32) -> (i32, i32) {
    %c0_i32 = arith.constant 0 : i32
    %c0_i32_0 = arith.constant 0 : i32
    %c0_i32_1 = arith.constant 0 : i32
    return %c0_i32, %c0_i32_0 : i32, i32
  }
  func.func @transform_2(%arg0: i32, %arg1: i32) -> (i32, i32) {
    %c0_i32 = arith.constant 0 : i32
    %c0_i32_0 = arith.constant 0 : i32
    %c0_i32_1 = arith.constant 0 : i32
    return %c0_i32, %c0_i32_0 : i32, i32
  }
  func.func @transform_3(%arg0: i32, %arg1: i32) -> (i32, i32, i32) {
    %c0_i32 = arith.constant 0 : i32
    %c0_i32_0 = arith.constant 0 : i32
    %c0_i32_1 = arith.constant 0 : i32
    %c0_i32_2 = arith.constant 0 : i32
    return %c0_i32, %c0_i32_0, %c0_i32_1 : i32, i32, i32
  }
  func.func @transform_4(%arg0: i32, %arg1: i32) -> (i32, i32, i32) {
    %c0_i32 = arith.constant 0 : i32
    %c0_i32_0 = arith.constant 0 : i32
    %c0_i32_1 = arith.constant 0 : i32
    %c0_i32_2 = arith.constant 0 : i32
    return %c0_i32, %c0_i32_0, %c0_i32_1 : i32, i32, i32
  }
  func.func @transform_5(%arg0: i32, %arg1: i32) -> (i32, i32) {
    %c0_i32 = arith.constant 0 : i32
    %c0_i32_0 = arith.constant 0 : i32
    return %arg0, %c0_i32 : i32, i32
  }
}

</mosaic_0001>

<bundles_post_ra>
// kernel: tpu_custom_call.1
= control target key start
LH: loop header
LB: loop body
LE: loop exit
PB: predicated region body
PF: predicated region fallthrough
CT: control target
= control target key end

     0   :  { %10 = vsyncpa [#allocation4], 0  ;;  %s1053_s0 = inlined_call_operand.hbm [shape: f32[8,128], index: 0, kind: input, shape index: {}]   ;;  %s1054_s1 = inlined_call_operand.hbm [shape: f32[128,128], index: 1, kind: input, shape index: {}]   ;;  %s1055_s2 = inlined_call_operand.vmem [shape: f32[1,128], index: 2, kind: input, shape index: {}]   ;;  %s1056_s3 = inlined_call_operand.hbm [shape: f32[3,128,128], index: 3, kind: input, shape index: {}]   ;;  %s1057_s4 = inlined_call_operand.vmem [shape: f32[3,1,128], index: 4, kind: input, shape index: {}]   ;;  %s1058_s5 = inlined_call_operand.hbm [shape: f32[8,128], index: 5, kind: output, shape index: {}]  }
   0x1   :  { %11 = vsyncpa [#allocation7], 0 }
   0x2   :  { %12 = vsyncpa [#allocation5], 0  ;;  %s912_s18 = smov 0   ;;  %s914_s19 = smov 0  }
   0x3   :  { %s916_s20 = smov 0  }
   0x4 LB: > { %s872_s21 = smov [#allocation6]   ;;  %s544_s23 = sadd.s32 4294967295, %s870_s20   ;;  %s870_s20 = sphi %s916_s20, %s18_s20   ;;  %s866_s19 = sphi %s914_s19, %s1065_s19   ;;  %s862_s18 = sphi %s912_s18, %s1064_s18  }
   0x5   : > { %s196_s22 = sshll.u32 %s872_s21, 4  ;;  %p545_p0 = scmp.ge.s32.totalorder %s870_s20, 1  ;;  %s197_s22 = int_to_ptr.vmem [resolvable:$true] %s196_s22 }
   0x6   : > { %p171_p1 = scmp.lt.s32.totalorder %s870_s20, 4  ;;  %p932_p2 = scmp.eq.s32.totalorder %s544_s23, 0 }
   0x7   : > { %s27_s27 = sadd.s32 1, %s866_s19  ;;  %s873_s29 = smov [#allocation3]  }
   0x8   : > { %p936_p3 = pnand %p545_p0, %p171_p1  ;;  %p949_p6 = scmp.ge.s32.totalorder %s27_s27, 3 }
   0x9   : > { %s186_s30 = sshll.u32 %s873_s29, 4  ;;  %s745_s6 = scalar_lea.vmem %s197_s22, 2048  ;;  %s187_s30 = int_to_ptr.vmem [resolvable:$true] %s186_s30 }
   0xa   : > { %p682_p4 = pneg %p936_p3  ;;  %p746_p8 = scmp.ne.s32.totalorder %s197_s22, %s745_s6 }
   0xb   : > { %p753_p11 = scmp.lt.s32.totalorder %s197_s22, %s197_s22  ;;  %p754_p12 = scmp.lt.s32.totalorder %s745_s6, %s745_s6 }
   0xc   : > { %p944_p5 = pnand %p932_p2, %p682_p4 }
   0xd   : > { %p755_p13 = por %p754_p12, %p753_p11 }
   0xe   : > { %p736_p7 = pneg %p944_p5 }
  0x10   : > { %p748_p9 = pnand %p746_p8, %p736_p7 }
  0x12   : > { %p749_p10 = pneg %p748_p9 }
  0x14   : > { %p756_p0 = pnand %p755_p13, %p749_p10 }
  0x16   : > { %759 = shalt.err (!%p756_p0)
}
  0x17   : > { %s874_s7 = smov 128   ;;  %s875_s8 = smov 8  }
  0x18   : > { %688 = dma.hbm_to_vmem [thread:$0]  (!%p944_p5), %s1054_s1, 2048, %s197_s22, [#allocation7], %s874_s7, %s874_s7, %s875_s8  }
  0x19   : > { %s1067_s27 = smov (%p949_p6, %s27_s27), 0  ;;  %s771_s11 = scalar_lea.vmem %s187_s30, 128 }
  0x1a   : > { %p772_p1 = scmp.ne.s32.totalorder %s187_s30, %s771_s11  ;;  %p779_p9 = scmp.lt.s32.totalorder %s187_s30, %s187_s30 }
  0x1b   : > { %p780_p10 = scmp.lt.s32.totalorder %s771_s11, %s771_s11 }
  0x1c   : > { %p774_p4 = pnand %p772_p1, %p736_p7 }
  0x1d   : > { %p781_p11 = por %p780_p10, %p779_p9 }
  0x1e   : > { %p775_p8 = pneg %p774_p4 }
  0x20   : > { %p782_p12 = pnand %p781_p11, %p775_p8 }
  0x22   : > { %785 = shalt.err (!%p782_p12)
}
  0x23   : > { %685 = dma.hbm_to_vmem [thread:$0]  (!%p944_p5), %s1053_s0, 128, %s187_s30, [#allocation4]  }
  0x24   : > { %s876_s14 = smov [#allocation8]  }
  0x25   : > { %s212_s15 = sshll.u32 %s876_s14, 4  ;;  %s213_s15 = int_to_ptr.vmem [resolvable:$true] %s212_s15 }
  0x26   : > { %s797_s16 = scalar_lea.vmem %s213_s15, 6144  ;;  %p805_p1 = scmp.lt.s32.totalorder %s213_s15, %s213_s15 }
  0x27   : > { %p798_p6 = scmp.ne.s32.totalorder %s213_s15, %s797_s16  ;;  %p806_p4 = scmp.lt.s32.totalorder %s797_s16, %s797_s16 }
  0x29   : > { %p800_p13 = pnand %p798_p6, %p736_p7  ;;  %p807_p8 = por %p806_p4, %p805_p1 }
  0x2b   : > { %p801_p0 = pneg %p800_p13 }
  0x2d   : > { %p808_p9 = pnand %p807_p8, %p801_p0 }
  0x2f   : > { %811 = shalt.err (!%p808_p9)
}
  0x30   : > { %691 = dma.hbm_to_vmem [thread:$0]  (!%p944_p5), %s1056_s3, 6144, %s213_s15, [#allocation7], %s874_s7, %s874_s7, %s875_s8  }
  0x31   : > { %231 = sbr.rel (%p936_p3) target bundleno = 543 (0x21f), region = 40 }
  0x36   : > { %849 = dma.done.wait (%p932_p2), [#allocation4], 128  }
  0x37   : > { %851 = vsyncadd (%p932_p2), [#allocation4], 4294967168 }
  0x38   : > { %853 = dma.done.wait (%p932_p2), [#allocation7], 8192  }
  0x39   : > { %855 = vsyncadd (%p932_p2), [#allocation7], 4294959104  ;;  %p553_p7 = scmp.ne.s32.totalorder %s862_s18, 0 }
  0x3b   : > { %260 = sbr.rel (%p553_p7) target bundleno = 293 (0x125), region = 56 }
  0x40   : > { %v277_v0 = vld [vmem:[#allocation6 + $0x78] sm:$0xff]  ;;  %v877_v1 = vmov 0.0   ;;  %v276_v2 = vld [vmem:[#allocation6 + $0x70] sm:$0xff]  ;;  %vm878_vm0 = vmmov 0   ;;  %v275_v3 = vld [vmem:[#allocation6 + $0x68] sm:$0xff] }
  0x41   : > { %596 = vmatprep.subr.mxu0 %v877_v1  ;;  %628 = vmatprep.mubr.msk.f32.mxu0 %vm878_vm0, %v877_v1  ;;  %v274_v4 = vld [vmem:[#allocation6 + $0x60] sm:$0xff]  ;;  %v273_v5 = vld [vmem:[#allocation6 + $0x58] sm:$0xff]  ;;  %v272_v6 = vld [vmem:[#allocation6 + $0x50] sm:$0xff] }
  0x42   : > { %597 = vmatpush3.msra.mxu0 %v277_v0  ;;  %v271_v7 = vld [vmem:[#allocation6 + $0x48] sm:$0xff]  ;;  %v270_v8 = vld [vmem:[#allocation6 + $0x40] sm:$0xff]  ;;  %v269_v9 = vld [vmem:[#allocation6 + $0x38] sm:$0xff] }
  0x43   : > { %598 = vmatprep.subr.mxu0 %v877_v1  ;;  %v268_v10 = vld [vmem:[#allocation6 + $0x30] sm:$0xff]  ;;  %v267_v11 = vld [vmem:[#allocation6 + $0x28] sm:$0xff]  ;;  %v266_v12 = vld [vmem:[#allocation6 + $0x20] sm:$0xff] }
  0x44   : > { %599 = vmatpush3.msra.mxu0 %v276_v2  ;;  %v265_v13 = vld [vmem:[#allocation6 + $0x18] sm:$0xff]  ;;  %v264_v14 = vld [vmem:[#allocation6 + $0x10] sm:$0xff]  ;;  %v263_v15 = vld [vmem:[#allocation6 + $0x8] sm:$0xff] }
  0x45   : > { %600 = vmatprep.subr.mxu0 %v877_v1  ;;  %v262_v16 = vld [vmem:[#allocation6] sm:$0xff]  ;;  %v261_v17 = vld [vmem:[#allocation3] sm:$0xff]  ;;  %v554_v18 = vld [vmem:[%s1055_s2] ss:$0 sm:$0xff] }
  0x46   : > { %601 = vmatpush3.msra.mxu0 %v275_v3 }
  0x47   : > { %602 = vmatprep.subr.mxu0 %v877_v1 }
  0x48   : > { %603 = vmatpush3.msra.mxu0 %v274_v4 }
  0x49   : > { %604 = vmatprep.subr.mxu0 %v877_v1 }
  0x4a   : > { %605 = vmatpush3.msra.mxu0 %v273_v5 }
  0x4b   : > { %606 = vmatprep.subr.mxu0 %v877_v1 }
  0x4c   : > { %607 = vmatpush3.msra.mxu0 %v272_v6 }
  0x4d   : > { %608 = vmatprep.subr.mxu0 %v877_v1 }
  0x4e   : > { %609 = vmatpush3.msra.mxu0 %v271_v7 }
  0x4f   : > { %610 = vmatprep.subr.mxu0 %v877_v1 }
  0x50   : > { %611 = vmatpush3.msra.mxu0 %v270_v8 }
  0x51   : > { %612 = vmatprep.subr.mxu0 %v877_v1 }
  0x52   : > { %613 = vmatpush3.msra.mxu0 %v269_v9 }
  0x53   : > { %614 = vmatprep.subr.mxu0 %v877_v1 }
  0x54   : > { %615 = vmatpush3.msra.mxu0 %v268_v10 }
  0x55   : > { %616 = vmatprep.subr.mxu0 %v877_v1 }
  0x56   : > { %617 = vmatpush3.msra.mxu0 %v267_v11 }
  0x57   : > { %618 = vmatprep.subr.mxu0 %v877_v1 }
  0x58   : > { %619 = vmatpush3.msra.mxu0 %v266_v12 }
  0x59   : > { %620 = vmatprep.subr.mxu0 %v877_v1 }
  0x5a   : > { %621 = vmatpush3.msra.mxu0 %v265_v13 }
  0x5b   : > { %622 = vmatprep.subr.mxu0 %v877_v1 }
  0x5c   : > { %623 = vmatpush3.msra.mxu0 %v264_v14 }
  0x5d   : > { %624 = vmatprep.subr.mxu0 %v877_v1 }
  0x5e   : > { %625 = vmatpush3.msra.mxu0 %v263_v15 }
  0x5f   : > { %626 = vmatprep.subr.mxu0 %v877_v1 }
  0x60   : > { %627 = vmatpush3.msra.mxu0 %v262_v16 }
  0x61   : > { %629 = vmatmul.mubr.f32.vlgmr.msra.gmra.mxu0 %v261_v17 }
 0x121   : > { %v351_v19 = vpop.f32.mrf.mxu0 }
 0x122   : > { %v352_v20 = vadd.f32 %v554_v18, %v351_v19 }
 0x123   : > { %v630_v21 = vpop.f32.mrf.mxu0 }
 0x124   : > { %355 = vst [vmem:[#allocation2] sm:$0xff] %v352_v20 }
 0x125 PF: > { %s555_s25 = sshll.u32 %s862_s18, 7  ;;  %v879_v22 = vmov 0.0   ;;  %vm880_vm1 = vmmov 0   ;;  %s375_s30 = scalar_lea.vmem %s1057_s4, %s862_s18 }
 0x126   : > { %631 = vmatprep.subr.mxu0 %v879_v22  ;;  %663 = vmatprep.mubr.msk.f32.mxu0 %vm880_vm1, %v879_v22  ;;  %s1004_s26 = scalar_lea.vmem [#allocation8], %s555_s25  ;;  %v556_v40 = vld [vmem:[%s375_s30] ss:$0 sm:$0xff]  ;;  %p557_p2 = scmp.ne.s32.totalorder %s862_s18, 2 }
 0x127   : > { %v374_v23 = vld [vmem:[%s1004_s26 + $0x78] sm:$0xff]  ;;  %v373_v24 = vld [vmem:[%s1004_s26 + $0x70] sm:$0xff]  ;;  %v372_v25 = vld [vmem:[%s1004_s26 + $0x68] sm:$0xff] }
 0x128   : > { %632 = vmatpush3.msra.mxu0 %v374_v23  ;;  %v371_v26 = vld [vmem:[%s1004_s26 + $0x60] sm:$0xff]  ;;  %v370_v27 = vld [vmem:[%s1004_s26 + $0x58] sm:$0xff]  ;;  %v369_v28 = vld [vmem:[%s1004_s26 + $0x50] sm:$0xff] }
 0x129   : > { %633 = vmatprep.subr.mxu0 %v879_v22  ;;  %v368_v29 = vld [vmem:[%s1004_s26 + $0x48] sm:$0xff]  ;;  %v367_v30 = vld [vmem:[%s1004_s26 + $0x40] sm:$0xff]  ;;  %v366_v31 = vld [vmem:[%s1004_s26 + $0x38] sm:$0xff] }
 0x12a   : > { %634 = vmatpush3.msra.mxu0 %v373_v24  ;;  %v365_v32 = vld [vmem:[%s1004_s26 + $0x30] sm:$0xff]  ;;  %v364_v33 = vld [vmem:[%s1004_s26 + $0x28] sm:$0xff]  ;;  %v363_v34 = vld [vmem:[%s1004_s26 + $0x20] sm:$0xff] }
 0x12b   : > { %635 = vmatprep.subr.mxu0 %v879_v22  ;;  %v362_v35 = vld [vmem:[%s1004_s26 + $0x18] sm:$0xff]  ;;  %v361_v36 = vld [vmem:[%s1004_s26 + $0x10] sm:$0xff]  ;;  %v360_v37 = vld [vmem:[%s1004_s26 + $0x8] sm:$0xff] }
 0x12c   : > { %636 = vmatpush3.msra.mxu0 %v372_v25  ;;  %v359_v38 = vld [vmem:[%s1004_s26] sm:$0xff] }
 0x12d   : > { %637 = vmatprep.subr.mxu0 %v879_v22  ;;  %v356_v39 = vld [vmem:[#allocation2] sm:$0xff] }
 0x12e   : > { %638 = vmatpush3.msra.mxu0 %v371_v26 }
 0x12f   : > { %639 = vmatprep.subr.mxu0 %v879_v22 }
 0x130   : > { %640 = vmatpush3.msra.mxu0 %v370_v27 }
 0x131   : > { %641 = vmatprep.subr.mxu0 %v879_v22 }
 0x132   : > { %642 = vmatpush3.msra.mxu0 %v369_v28 }
 0x133   : > { %643 = vmatprep.subr.mxu0 %v879_v22 }
 0x134   : > { %644 = vmatpush3.msra.mxu0 %v368_v29 }
 0x135   : > { %645 = vmatprep.subr.mxu0 %v879_v22 }
 0x136   : > { %646 = vmatpush3.msra.mxu0 %v367_v30 }
 0x137   : > { %647 = vmatprep.subr.mxu0 %v879_v22 }
 0x138   : > { %648 = vmatpush3.msra.mxu0 %v366_v31 }
 0x139   : > { %649 = vmatprep.subr.mxu0 %v879_v22 }
 0x13a   : > { %650 = vmatpush3.msra.mxu0 %v365_v32 }
 0x13b   : > { %651 = vmatprep.subr.mxu0 %v879_v22 }
 0x13c   : > { %652 = vmatpush3.msra.mxu0 %v364_v33 }
 0x13d   : > { %653 = vmatprep.subr.mxu0 %v879_v22 }
 0x13e   : > { %654 = vmatpush3.msra.mxu0 %v363_v34 }
 0x13f   : > { %655 = vmatprep.subr.mxu0 %v879_v22 }
 0x140   : > { %656 = vmatpush3.msra.mxu0 %v362_v35 }
 0x141   : > { %657 = vmatprep.subr.mxu0 %v879_v22 }
 0x142   : > { %658 = vmatpush3.msra.mxu0 %v361_v36 }
 0x143   : > { %659 = vmatprep.subr.mxu0 %v879_v22 }
 0x144   : > { %660 = vmatpush3.msra.mxu0 %v360_v37 }
 0x145   : > { %661 = vmatprep.subr.mxu0 %v879_v22 }
 0x146   : > { %662 = vmatpush3.msra.mxu0 %v359_v38 }
 0x147   : > { %664 = vmatmul.mubr.f32.vlgmr.msra.gmra.mxu0 %v356_v39 }
 0x207   : > { %v449_v41 = vpop.f32.mrf.mxu0 }
 0x208   : > { %v450_v42 = vadd.f32 %v556_v40, %v449_v41 }
 0x209   : > { %v665_v43 = vpop.f32.mrf.mxu0 }
 0x20a   : > { %v453_v44 = vmax.f32 %v450_v42, 0.0  ;;  %459 = sbr.rel (%p557_p2) target bundleno = 528 (0x210), region = 60 }
 0x20c   : > { %v454_v45 = vadd.f32 %v453_v44, %v356_v39 }
 0x20e   : > { %455 = vst [vmem:[#allocation2] sm:$0xff] %v454_v45 }
 0x20f   : > { %460 = vst [vmem:[#allocation9] sm:$0xff] %v454_v45 }
 0x210 PF: > { %p1029_p3 = scmp.eq.s32.totalorder %s544_s23, 2  ;;  %s881_s7 = smov [#allocation9]  }
 0x211   : > { %s470_s8 = sshll.u32 %s881_s7, 4  ;;  %s471_s8 = int_to_ptr.vmem [resolvable:$true] %s470_s8 }
 0x212   : > { %s812_s9 = scalar_lea.vmem %s471_s8, 128  ;;  %p819_p12 = scmp.lt.s32.totalorder %s471_s8, %s471_s8 }
 0x213   : > { %p813_p5 = scmp.ne.s32.totalorder %s471_s8, %s812_s9  ;;  %p820_p6 = scmp.lt.s32.totalorder %s812_s9, %s812_s9 }
 0x215   : > { %p814_p10 = pnand %p813_p5, %p1029_p3  ;;  %p821_p13 = por %p820_p6, %p819_p12 }
 0x217   : > { %p815_p11 = pneg %p814_p10 }
 0x219   : > { %p822_p0 = pnand %p821_p13, %p815_p11 }
 0x21b   : > { %825 = shalt.err (!%p822_p0)
}
 0x21c   : > { %679 = dma.vmem_to_hbm [thread:$0]  (%p1029_p3), %s471_s8, 128, %s1058_s5, [#allocation5]  }
 0x21d   : > { %857 = dma.done.wait (%p1029_p3), [#allocation5], 128  }
 0x21e   : > { %859 = vsyncadd (%p1029_p3), [#allocation5], 4294967168 }
 0x21f PF: > { %s18_s20 = sadd.s32 1, %s870_s20   ;;  %s1064_s18 = smov %s866_s19 }
 0x220   : > { %p15_p1 = scmp.ge.s32.totalorder %s18_s20, 5   ;;  %s1065_s19 = smov %s1067_s27 }
 0x222   :  { %17 = sbr.rel (!%p15_p1) target bundleno = 4 (0x4), region = 89 }
 0x227   :  { %483 = vsyncpa [#allocation4], 1 }
 0x228   :  { %485 = vsyncpa [#allocation4 + $0x1], 1 }
 0x229   :  { %486 = vsyncpa [#allocation7], 1 }
 0x22a   :  { %487 = vsyncpa [#allocation5], 1 }
 0x22b   :  { %489 = vsyncpa [#allocation5 + $0x1], 1 }

</bundles_post_ra>
